<compile_context>
chip_gen: v6e
topology: v6e:2x2x1
jax: 0.10.0
libtpu: 0.0.40
codegen_flags: <defaults>
</compile_context>

<pallas_src>
import math

import jax
import jax.numpy as jnp
from jax import lax
from jax.experimental import pallas as pl
from jax.experimental.pallas import tpu as pltpu


def _conv3x3_rows_kernel(x_ref, w_ref, o_ref, xpad_ref):
    # x_ref:    [F, H, W*Cin]        F frames, channels-last rows (lane axis)
    # w_ref:    [3, W*Cin, W*Cout]   banded weight, one slab per kernel row kh
    # o_ref:    [F*H, W*Cout]        lane-dense output rows (W*Cout = 128 here)
    # xpad_ref: [F, H+2, W*Cin]      VMEM scratch: H-halo zero padding
    F, H, WC = x_ref.shape
    N = o_ref.shape[-1]

    # Zero-pad along H inside VMEM (no extra HBM pad pass in the wrapper).
    xpad_ref[...] = jnp.zeros_like(xpad_ref)
    xpad_ref[:, 1:H + 1, :] = x_ref[...]

    acc = jnp.zeros((F * H, N), jnp.float32)
    for kh in range(3):  # 3 MXU matmuls; K = W*Cin, N = W*Cout (lane-dense)
        lhs = xpad_ref[:, kh:kh + H, :].reshape(F * H, WC)
        acc = acc + jnp.dot(lhs, w_ref[kh], preferred_element_type=jnp.float32)

    o_ref[...] = acc.astype(o_ref.dtype)


def _conv3x3_rows(x_rows, w_band, *, frames_per_block=8):
    """x_rows: [B, H, W*Cin], w_band: [3, W*Cin, W*Cout] -> [B*H, W*Cout]."""
    B, H, WC = x_rows.shape
    N = w_band.shape[-1]
    F = math.gcd(B, frames_per_block)  # frames per grid step (8 for B=16)

    return pl.pallas_call(
        _conv3x3_rows_kernel,
        out_shape=jax.ShapeDtypeStruct((B * H, N), x_rows.dtype),
        grid_spec=pltpu.PrefetchScalarGridSpec(
            num_scalar_prefetch=0,
            grid=(B // F,),
            in_specs=[
                pl.BlockSpec((F, H, WC), lambda b: (b, 0, 0)),
                pl.BlockSpec((3, WC, N), lambda b: (0, 0, 0)),
            ],
            out_specs=pl.BlockSpec((F * H, N), lambda b: (b, 0)),
            scratch_shapes=[pltpu.VMEM((F, H + 2, WC), x_rows.dtype)],
        ),
        compiler_params=pltpu.CompilerParams(
            dimension_semantics=("parallel",)),
    )(x_rows, w_band)


def _banded_conv_weight(w_oihw, width):
    """OIHW 3x3 conv weight -> [3, W*Cin, W*Cout] banded matmul weight.

    band[kh, w_in*Cin + ci, w_out*Cout + co] = w[co, ci, kh, w_in - w_out + 1]
    for |w_in - w_out| <= 1, else 0.  This folds the W-direction zero padding
    of a stride-1 / pad-1 conv directly into the matrix.
    """
    c_in, c_out = w_oihw.shape[1], w_oihw.shape[0]
    wt = jnp.transpose(w_oihw, (2, 3, 1, 0))                 # [kh, kw, ci, co]
    eye_band = jnp.stack(
        [jnp.eye(width, width, k=1 - kw, dtype=wt.dtype) for kw in range(3)])
    # band5[kh, w_in, ci, w_out, co]
    band5 = jnp.einsum('auv,kaio->kuivo', eye_band, wt)
    return band5.reshape(3, width * c_in, width * c_out)


def set_block_wrapper_forward(x, w_oihw):
    """Pallas implementation of SetBlockWrapper(Conv2d 3x3, pad=1, no bias).

    x:      [n, c_in, s, h, w]   (PyTorch layout)
    w_oihw: [c_out, c_in, 3, 3]  (PyTorch Conv2d weight layout)
    returns [n, c_out, s, h, w]
    """
    n, c_in, s, h, w = x.shape
    c_out = w_oihw.shape[0]
    B = n * s

    # [n, c, s, h, w] -> [n, s, h, w, c] -> [B, h, w*c]  (single transpose)
    x_rows = jnp.transpose(x, (0, 2, 3, 4, 1)).reshape(B, h, w * c_in)
    w_band = _banded_conv_weight(w_oihw, w)

    y_rows = _conv3x3_rows(x_rows, w_band)                   # [B*h, w*c_out]

    # [B*h, w*c_out] -> [n, s, h, w, c_out] -> [n, c_out, s, h, w]
    y = y_rows.reshape(n, s, h, w, c_out)
    return jnp.transpose(y, (0, 4, 1, 2, 3))


if __name__ == "__main__":
    # Small shapes consistent with the forward: n=2, c_in=4, s=8, h=w=16.
    n, c_in, s, h, w = 2, 4, 8, 16, 16
    c_out = 8

    key = jax.random.PRNGKey(0)
    kx, kwt = jax.random.split(key)
    x = jax.random.normal(kx, (n, c_in, s, h, w), dtype=jnp.float32)
    # Deterministic Conv2d weight init (fan-in scaled), PyTorch OIHW layout.
    w_oihw = jax.random.normal(kwt, (c_out, c_in, 3, 3), dtype=jnp.float32)
    w_oihw = w_oihw * (1.0 / jnp.sqrt(c_in * 3 * 3))

    fwd = jax.jit(set_block_wrapper_forward)
    y = jax.block_until_ready(fwd(x, w_oihw))
    assert y.shape == (n, c_out, s, h, w)

    # Reference: frame-wise conv with XLA (same semantics as the PyTorch module).
    x_frames = jnp.transpose(x, (0, 2, 1, 3, 4)).reshape(n * s, c_in, h, w)
    ref_frames = lax.conv_general_dilated(
        x_frames, w_oihw, window_strides=(1, 1), padding="SAME",
        dimension_numbers=("NCHW", "OIHW", "NCHW"))
    ref = jnp.transpose(ref_frames.reshape(n, s, c_out, h, w), (0, 2, 1, 3, 4))
    max_err = float(jnp.max(jnp.abs(y - ref)))
    assert max_err < 1e-3, f"mismatch vs reference: {max_err}"

    print("KERNEL_OK")
</pallas_src>

<mosaic_0001>
module attributes {stable_mosaic.version = 11 : i64} {
  func.func @_conv3x3_rows_kernel(%arg0: i32, %arg1: memref<8x16x64xf32, #tpu.memory_space<vmem>>, %arg2: memref<3x64x128xf32, #tpu.memory_space<vmem>>, %arg3: memref<128x128xf32, #tpu.memory_space<vmem>>, %arg4: memref<8x18x64xf32, #tpu.memory_space<vmem>>) attributes {dimension_semantics = [#tpu.dimension_semantics<parallel>], iteration_bounds = array<i64: 2>, scalar_prefetch = 0 : i64, scratch_operands = 1 : i64, tpu.core_type = #tpu.core_type<tc>, window_params = [{transform_indices = @transform_0, window_bounds = array<i64: 8, 16, 64>}, {pipeline_mode = #tpu.pipeline_mode<synchronous>, transform_indices = @transform_1, window_bounds = array<i64: 3, 64, 128>}, {transform_indices = @transform_2, window_bounds = array<i64: 128, 128>}]} {
    %cst = arith.constant 0.000000e+00 : f32
    %0 = vector.broadcast %cst : f32 to vector<8x18x64xf32>
    %c0 = arith.constant 0 : index
    %c0_0 = arith.constant 0 : index
    %c0_1 = arith.constant 0 : index
    %1 = vector.load %arg4[%c0, %c0_0, %c0_1] : memref<8x18x64xf32, #tpu.memory_space<vmem>>, vector<8x18x64xf32>
    tpu.vector_store %arg4[%c0, %c0_0, %c0_1], %0 {strides = array<i32>} : memref<8x18x64xf32, #tpu.memory_space<vmem>>, vector<8x18x64xf32>,
    %c0_2 = arith.constant 0 : index
    %c0_3 = arith.constant 0 : index
    %c0_4 = arith.constant 0 : index
    %2 = vector.load %arg1[%c0_2, %c0_3, %c0_4] : memref<8x16x64xf32, #tpu.memory_space<vmem>>, vector<8x16x64xf32>
    %c0_5 = arith.constant 0 : index
    %c1 = arith.constant 1 : index
    %c0_6 = arith.constant 0 : index
    %3 = vector.load %arg4[%c0_5, %c1, %c0_6] : memref<8x18x64xf32, #tpu.memory_space<vmem>>, vector<8x16x64xf32>
    tpu.vector_store %arg4[%c0_5, %c1, %c0_6], %2 {strides = array<i32>} : memref<8x18x64xf32, #tpu.memory_space<vmem>>, vector<8x16x64xf32>,
    %cst_7 = arith.constant 0.000000e+00 : f32
    %4 = vector.broadcast %cst_7 : f32 to vector<128x128xf32>
    %c0_8 = arith.constant 0 : index
    %c0_9 = arith.constant 0 : index
    %c0_10 = arith.constant 0 : index
    %5 = vector.load %arg4[%c0_8, %c0_9, %c0_10] : memref<8x18x64xf32, #tpu.memory_space<vmem>>, vector<8x16x64xf32>
    %6 = vector.shape_cast %5 : vector<8x16x64xf32> to vector<128x64xf32>
    %c0_11 = arith.constant 0 : index
    %c0_12 = arith.constant 0 : index
    %c0_13 = arith.constant 0 : index
    %7 = vector.load %arg2[%c0_11, %c0_12, %c0_13] : memref<3x64x128xf32, #tpu.memory_space<vmem>>, vector<1x64x128xf32>
    %8 = vector.shape_cast %7 : vector<1x64x128xf32> to vector<64x128xf32>
    %cst_14 = arith.constant dense<0.000000e+00> : vector<128x128xf32>
    %9 = tpu.matmul %6, %8, %cst_14 {dimension_numbers = #tpu.dot_dimension_numbers<[1], [0], [0], [1], [0, 0, 1, 1], [], []>} : vector<128x64xf32>, vector<64x128xf32>, vector<128x128xf32> -> vector<128x128xf32>
    %10 = arith.addf %4, %9 : vector<128x128xf32>
    %c0_15 = arith.constant 0 : index
    %c1_16 = arith.constant 1 : index
    %c0_17 = arith.constant 0 : index
    %11 = vector.load %arg4[%c0_15, %c1_16, %c0_17] : memref<8x18x64xf32, #tpu.memory_space<vmem>>, vector<8x16x64xf32>
    %12 = vector.shape_cast %11 : vector<8x16x64xf32> to vector<128x64xf32>
    %c1_18 = arith.constant 1 : index
    %c0_19 = arith.constant 0 : index
    %c0_20 = arith.constant 0 : index
    %13 = vector.load %arg2[%c1_18, %c0_19, %c0_20] : memref<3x64x128xf32, #tpu.memory_space<vmem>>, vector<1x64x128xf32>
    %14 = vector.shape_cast %13 : vector<1x64x128xf32> to vector<64x128xf32>
    %cst_21 = arith.constant dense<0.000000e+00> : vector<128x128xf32>
    %15 = tpu.matmul %12, %14, %cst_21 {dimension_numbers = #tpu.dot_dimension_numbers<[1], [0], [0], [1], [0, 0, 1, 1], [], []>} : vector<128x64xf32>, vector<64x128xf32>, vector<128x128xf32> -> vector<128x128xf32>
    %16 = arith.addf %10, %15 : vector<128x128xf32>
    %c0_22 = arith.constant 0 : index
    %c2 = arith.constant 2 : index
    %c0_23 = arith.constant 0 : index
    %17 = vector.load %arg4[%c0_22, %c2, %c0_23] : memref<8x18x64xf32, #tpu.memory_space<vmem>>, vector<8x16x64xf32>
    %18 = vector.shape_cast %17 : vector<8x16x64xf32> to vector<128x64xf32>
    %c2_24 = arith.constant 2 : index
    %c0_25 = arith.constant 0 : index
    %c0_26 = arith.constant 0 : index
    %19 = vector.load %arg2[%c2_24, %c0_25, %c0_26] : memref<3x64x128xf32, #tpu.memory_space<vmem>>, vector<1x64x128xf32>
    %20 = vector.shape_cast %19 : vector<1x64x128xf32> to vector<64x128xf32>
    %cst_27 = arith.constant dense<0.000000e+00> : vector<128x128xf32>
    %21 = tpu.matmul %18, %20, %cst_27 {dimension_numbers = #tpu.dot_dimension_numbers<[1], [0], [0], [1], [0, 0, 1, 1], [], []>} : vector<128x64xf32>, vector<64x128xf32>, vector<128x128xf32> -> vector<128x128xf32>
    %22 = arith.addf %16, %21 : vector<128x128xf32>
    %c0_28 = arith.constant 0 : index
    %c0_29 = arith.constant 0 : index
    %23 = vector.load %arg3[%c0_28, %c0_29] : memref<128x128xf32, #tpu.memory_space<vmem>>, vector<128x128xf32>
    tpu.vector_store %arg3[%c0_28, %c0_29], %22 {strides = array<i32>} : memref<128x128xf32, #tpu.memory_space<vmem>>, vector<128x128xf32>,
    return
  }
  func.func @transform_0(%arg0: i32) -> (i32, i32, i32) {
    %c0_i32 = arith.constant 0 : i32
    %c0_i32_0 = arith.constant 0 : i32
    %c0_i32_1 = arith.constant 0 : i32
    return %arg0, %c0_i32, %c0_i32_0 : i32, i32, i32
  }
  func.func @transform_1(%arg0: i32) -> (i32, i32, i32) {
    %c0_i32 = arith.constant 0 : i32
    %c0_i32_0 = arith.constant 0 : i32
    %c0_i32_1 = arith.constant 0 : i32
    %c0_i32_2 = arith.constant 0 : i32
    return %c0_i32, %c0_i32_0, %c0_i32_1 : i32, i32, i32
  }
  func.func @transform_2(%arg0: i32) -> (i32, i32) {
    %c0_i32 = arith.constant 0 : i32
    %c0_i32_0 = arith.constant 0 : i32
    return %arg0, %c0_i32 : i32, i32
  }
}

</mosaic_0001>

<bundles_post_ra>
// kernel: set_block_wrapper_forward.1
= control target key start
LH: loop header
LB: loop body
LE: loop exit
PB: predicated region body
PF: predicated region fallthrough
CT: control target
= control target key end

     0   :  { %s1267_s9 = smov 0   ;;  %s1503_s0 = inlined_call_operand.vmem [shape: f32[16,16,64], index: 0, kind: input, shape index: {}]   ;;  %s1504_s1 = inlined_call_operand.vmem [shape: f32[3,64,128], index: 1, kind: input, shape index: {}]   ;;  %s1505_s2 = inlined_call_operand.vmem [shape: f32[256,128], index: 2, kind: output, shape index: {}]  }
   0x1 LB: > { %s949_s10 = sadd.s32 4294967295, %s1249_s9   ;;  %p953_p0 = scmp.ge.s32.totalorder %s1249_s9, 1  ;;  %s1249_s9 = sphi %s1267_s9, %s12_s9  }
   0x2   : > { %p114_p1 = scmp.lt.s32.totalorder %s1249_s9, 3 }
   0x4   : > { %p115_p2 = pnand %p953_p0, %p114_p1 }
   0x5   : > { %s1283_s15 = sshll.u32 (!%p115_p2), %s949_s10, 3  ;;  %s957_s12 = sshll.u32 (!%p115_p2), %s949_s10, 4 }
   0x6   : > { %118 = sbr.rel (%p115_p2) target bundleno = 283 (0x11b), region = 28  ;;  %p138_p3 = scmp.lt.s32.totalorder (!%p115_p2), %s1283_s15, 15 }
   0x7   : > { %p145_p4 = scmp.lt.s32.totalorder (!%p115_p2), %s957_s12, 31 }
   0xb   : > { %v966_v0 = vld [vmem:[%s1504_s1 + $0x78] sm:$0xff]  ;;  %v965_v1 = vld [vmem:[%s1504_s1 + $0x70] sm:$0xff]  ;;  %vm150_vm0 = vcmask 523264   ;;  %v1251_v2 = vmov 0.0   ;;  %vm153_vm1 = vcmask 517120   ;;  %v964_v3 = vld [vmem:[%s1504_s1 + $0x68] sm:$0xff] }
   0xc   : > { %1218 = vmatprep.subr.mxu1 %v966_v0  ;;  %1098 = vmatprep.subr.mxu0 %v966_v0  ;;  %164 = vst.msk [vmem:[#allocation2 + $0x60] sm:$0xff] %vm150_vm0, %v1251_v2  ;;  %165 = vst.msk [vmem:[#allocation2 + $0x68] sm:$0xff] %vm150_vm0, %v1251_v2  ;;  %s1507_s15 = smov (!%p138_p3, %s1283_s15), 15  ;;  %v963_v4 = vld [vmem:[%s1504_s1 + $0x60] sm:$0xff]  ;;  %v962_v5 = vld [vmem:[%s1504_s1 + $0x58] sm:$0xff]  ;;  %s1509_s12 = smov (!%p145_p4, %s957_s12), 31 }
   0xd   : > { %151 = vst.msk [vmem:[#allocation2] sm:$0xff] %vm150_vm0, %v1251_v2  ;;  %152 = vst.msk [vmem:[#allocation2 + $0x8] sm:$0xff] %vm150_vm0, %v1251_v2  ;;  %1226 = vmatpush3.msra.mxu1 %v966_v0  ;;  %1099 = vmatpush3.msra.mxu0 %v966_v0  ;;  %s1025_s20 = sshll.u32 %s1507_s15, 4  ;;  %v961_v6 = vld [vmem:[%s1504_s1 + $0x50] sm:$0xff]  ;;  %v960_v10 = vld [vmem:[%s1504_s1 + $0x48] sm:$0xff]  ;;  %s958_s13 = sshll.u32 %s1509_s12, 3 }
   0xe   : > { %155 = vst.msk [vmem:[#allocation2 + $0x18] sm:$0xff] %vm150_vm0, %v1251_v2  ;;  %156 = vst.msk [vmem:[#allocation2 + $0x20] sm:$0xff] %vm150_vm0, %v1251_v2  ;;  %1219 = vmatprep.subr.mxu1 %v965_v1  ;;  %1100 = vmatprep.subr.mxu0 %v965_v1  ;;  %s1320_s27 = scalar_lea.vmem %s1503_s0, %s1025_s20  ;;  %v959_v23 = vld [vmem:[%s1504_s1 + $0x40] sm:$0xff]  ;;  %v231_v25 = vld [vmem:[%s1504_s1 + $0x38] sm:$0xff]  ;;  %s1475_s16 = scalar_lea.vmem %s1505_s2, %s958_s13 }
   0xf   : > { %158 = vst.msk [vmem:[#allocation2 + $0x30] sm:$0xff] %vm150_vm0, %v1251_v2  ;;  %159 = vst.msk [vmem:[#allocation2 + $0x38] sm:$0xff] %vm150_vm0, %v1251_v2  ;;  %1227 = vmatpush3.msra.mxu1 %v965_v1  ;;  %1101 = vmatpush3.msra.mxu0 %v965_v1  ;;  %v184_v7 = vld [vmem:[%s1320_s27 + $0x40] sm:$0xff]  ;;  %v185_v9 = vld [vmem:[%s1320_s27 + $0x48] sm:$0xff] }
  0x10   : > { %161 = vst.msk [vmem:[#allocation2 + $0x48] sm:$0xff] %vm150_vm0, %v1251_v2  ;;  %162 = vst.msk [vmem:[#allocation2 + $0x50] sm:$0xff] %vm150_vm0, %v1251_v2  ;;  %1220 = vmatprep.subr.mxu1 %v964_v3  ;;  %1102 = vmatprep.subr.mxu0 %v964_v3  ;;  %v176_v8 = vld [vmem:[%s1320_s27] sm:$0xff]  ;;  %v177_v11 = vld [vmem:[%s1320_s27 + $0x8] sm:$0xff] }
  0x11   : > { %167 = vst.msk [vmem:[#allocation2 + $0x78] sm:$0xff] %vm150_vm0, %v1251_v2  ;;  %168 = vst.msk [vmem:[#allocation2 + $0x80] sm:$0xff] %vm150_vm0, %v1251_v2  ;;  %1228 = vmatpush3.msra.mxu1 %v964_v3  ;;  %1103 = vmatpush3.msra.mxu0 %v964_v3  ;;  %v186_v12 = vld [vmem:[%s1320_s27 + $0x50] sm:$0xff]  ;;  %v187_v14 = vld [vmem:[%s1320_s27 + $0x58] sm:$0xff] }
  0x12   : > { %170 = vst.msk [vmem:[#allocation2 + $0x90] sm:$0xff] %vm150_vm0, %v1251_v2  ;;  %171 = vst.msk [vmem:[#allocation2 + $0x98] sm:$0xff] %vm150_vm0, %v1251_v2  ;;  %1221 = vmatprep.subr.mxu1 %v963_v4  ;;  %1104 = vmatprep.subr.mxu0 %v963_v4  ;;  %v178_v13 = vld [vmem:[%s1320_s27 + $0x10] sm:$0xff]  ;;  %v179_v15 = vld [vmem:[%s1320_s27 + $0x18] sm:$0xff] }
  0x13   : > { %173 = vst.msk [vmem:[#allocation2 + $0xa8] sm:$0xff] %vm150_vm0, %v1251_v2  ;;  %174 = vst.msk [vmem:[#allocation2 + $0xb0] sm:$0xff] %vm150_vm0, %v1251_v2  ;;  %1229 = vmatpush3.msra.mxu1 %v963_v4  ;;  %1105 = vmatpush3.msra.mxu0 %v963_v4  ;;  %v188_v16 = vld [vmem:[%s1320_s27 + $0x60] sm:$0xff]  ;;  %v189_v18 = vld [vmem:[%s1320_s27 + $0x68] sm:$0xff] }
  0x14   : > { %166 = vst.msk [vmem:[#allocation2 + $0x70] sm:$0x3] %vm153_vm1, %v1251_v2  ;;  %154 = vst.msk [vmem:[#allocation2 + $0x10] sm:$0x3] %vm153_vm1, %v1251_v2  ;;  %1222 = vmatprep.subr.mxu1 %v962_v5  ;;  %1106 = vmatprep.subr.mxu0 %v962_v5  ;;  %v180_v17 = vld [vmem:[%s1320_s27 + $0x20] sm:$0xff]  ;;  %v181_v19 = vld [vmem:[%s1320_s27 + $0x28] sm:$0xff] }
  0x15   : > { %157 = vst.msk [vmem:[#allocation2 + $0x28] sm:$0x3] %vm153_vm1, %v1251_v2  ;;  %160 = vst.msk [vmem:[#allocation2 + $0x40] sm:$0x3] %vm153_vm1, %v1251_v2  ;;  %1230 = vmatpush3.msra.mxu1 %v962_v5  ;;  %1107 = vmatpush3.msra.mxu0 %v962_v5  ;;  %v190_v20 = vld [vmem:[%s1320_s27 + $0x70] sm:$0xff]  ;;  %v191_v22 = vld [vmem:[%s1320_s27 + $0x78] sm:$0xff] }
  0x16   : > { %163 = vst.msk [vmem:[#allocation2 + $0x58] sm:$0x3] %vm153_vm1, %v1251_v2  ;;  %169 = vst.msk [vmem:[#allocation2 + $0x88] sm:$0x3] %vm153_vm1, %v1251_v2  ;;  %1223 = vmatprep.subr.mxu1 %v961_v6  ;;  %1108 = vmatprep.subr.mxu0 %v961_v6  ;;  %v182_v21 = vld [vmem:[%s1320_s27 + $0x30] sm:$0xff]  ;;  %v183_v24 = vld [vmem:[%s1320_s27 + $0x38] sm:$0xff] }
  0x17   : > { %172 = vst.msk [vmem:[#allocation2 + $0xa0] sm:$0x3] %vm153_vm1, %v1251_v2  ;;  %175 = vst.msk [vmem:[#allocation2 + $0xb8] sm:$0x3] %vm153_vm1, %v1251_v2  ;;  %1231 = vmatpush3.msra.mxu1 %v961_v6  ;;  %1109 = vmatpush3.msra.mxu0 %v961_v6  ;;  %v1006_v30 = vld [vmem:[%s1504_s1 + $0xb8] sm:$0xff]  ;;  %v230_v31 = vld [vmem:[%s1504_s1 + $0x30] sm:$0xff] }
  0x18   : > { %200 = vst.msk [vmem:[#allocation2 + $0x61] sm:$0xff] %vm150_vm0, %v184_v7  ;;  %192 = vst.msk [vmem:[#allocation2 + $0x1] sm:$0xff] %vm150_vm0, %v176_v8  ;;  %1224 = vmatprep.subr.mxu1 %v960_v10  ;;  %1110 = vmatprep.subr.mxu0 %v960_v10  ;;  %v1005_v33 = vld [vmem:[%s1504_s1 + $0xb0] sm:$0xff]  ;;  %v229_v36 = vld [vmem:[%s1504_s1 + $0x28] sm:$0xff] }
  0x19   : > { %201 = vst.msk [vmem:[#allocation2 + $0x69] sm:$0xff] %vm150_vm0, %v185_v9  ;;  %193 = vst.msk [vmem:[#allocation2 + $0x9] sm:$0xff] %vm150_vm0, %v177_v11  ;;  %1232 = vmatpush3.msra.mxu1 %v960_v10  ;;  %1111 = vmatpush3.msra.mxu0 %v960_v10  ;;  %v1004_v38 = vld [vmem:[%s1504_s1 + $0xa8] sm:$0xff]  ;;  %v228_v39 = vld [vmem:[%s1504_s1 + $0x20] sm:$0xff] }
  0x1a   : > { %202 = vst.msk [vmem:[#allocation2 + $0x79] sm:$0xff] %vm150_vm0, %v186_v12  ;;  %194 = vst.msk [vmem:[#allocation2 + $0x19] sm:$0xff] %vm150_vm0, %v178_v13  ;;  %1225 = vmatprep.subr.mxu1 %v959_v23  ;;  %1112 = vmatprep.subr.mxu0 %v959_v23  ;;  %v1003_v41 = vld [vmem:[%s1504_s1 + $0xa0] sm:$0xff]  ;;  %v227_v44 = vld [vmem:[%s1504_s1 + $0x18] sm:$0xff] }
  0x1b   : > { %203 = vst.msk [vmem:[#allocation2 + $0x81] sm:$0xff] %vm150_vm0, %v187_v14  ;;  %195 = vst.msk [vmem:[#allocation2 + $0x21] sm:$0xff] %vm150_vm0, %v179_v15  ;;  %1233 = vmatpush3.msra.mxu1 %v959_v23  ;;  %1113 = vmatpush3.msra.mxu0 %v959_v23  ;;  %v1002_v46 = vld [vmem:[%s1504_s1 + $0x98] sm:$0xff]  ;;  %v226_v47 = vld [vmem:[%s1504_s1 + $0x10] sm:$0xff] }
  0x1c   : > { %204 = vst.msk [vmem:[#allocation2 + $0x91] sm:$0xff] %vm150_vm0, %v188_v16  ;;  %196 = vst.msk [vmem:[#allocation2 + $0x31] sm:$0xff] %vm150_vm0, %v180_v17  ;;  %1138 = vmatprep.subr.mxu1 %v231_v25  ;;  %1178 = vmatprep.subr.mxu0 %v1006_v30  ;;  %v1001_v49 = vld [vmem:[%s1504_s1 + $0x90] sm:$0xff]  ;;  %v225_v52 = vld [vmem:[%s1504_s1 + $0x8] sm:$0xff] }
  0x1d   : > { %205 = vst.msk [vmem:[#allocation2 + $0x99] sm:$0xff] %vm150_vm0, %v189_v18  ;;  %197 = vst.msk [vmem:[#allocation2 + $0x39] sm:$0xff] %vm150_vm0, %v181_v19  ;;  %v1000_v54 = vld [vmem:[%s1504_s1 + $0x88] sm:$0xff]  ;;  %v224_v55 = vld [vmem:[%s1504_s1] sm:$0xff] }
  0x1e   : > { %206 = vst.msk [vmem:[#allocation2 + $0xa9] sm:$0xff] %vm150_vm0, %v190_v20  ;;  %198 = vst.msk [vmem:[#allocation2 + $0x49] sm:$0xff] %vm150_vm0, %v182_v21  ;;  %v999_v57 = vld [vmem:[%s1504_s1 + $0x80] sm:$0xff] }
  0x1f   : > { %207 = vst.msk [vmem:[#allocation2 + $0xb1] sm:$0xff] %vm150_vm0, %v191_v22  ;;  %199 = vst.msk [vmem:[#allocation2 + $0x51] sm:$0xff] %vm150_vm0, %v183_v24  ;;  %v240_v26 = vld [vmem:[#allocation2 + $0x61] sm:$0xff] }
  0x20   : > { %v232_v27 = vld [vmem:[#allocation2 + $0x1] sm:$0xff]  ;;  %v241_v28 = vld [vmem:[#allocation2 + $0x69] sm:$0xff]  ;;  %1126 = vmatprep.mubr.msk.f32.mxu1 %vm150_vm0, %v240_v26 }
  0x21   : > { %v233_v29 = vld [vmem:[#allocation2 + $0x9] sm:$0xff]  ;;  %1114 = vmatprep.mubr.msk.f32.mxu0 %vm150_vm0, %v232_v27  ;;  %1127 = vmatmul.mubr.msk.f32.vlgmr.msra.gmra.mxu1 %vm150_vm0, %v241_v28  ;;  %v242_v32 = vld [vmem:[#allocation2 + $0x79] sm:$0xff] }
  0x22   : > { %1115 = vmatmul.mubr.msk.f32.vlgmr.msra.gmra.mxu0 %vm150_vm0, %v233_v29  ;;  %1139 = vmatpush3.msra.mxu1 %v231_v25  ;;  %v234_v34 = vld [vmem:[#allocation2 + $0x19] sm:$0xff]  ;;  %v243_v35 = vld [vmem:[#allocation2 + $0x81] sm:$0xff]  ;;  %v644_v61 = vld [vmem:[#allocation2 + $0xa] sm:$0xff] }
  0x23   : > { %1140 = vmatprep.subr.mxu1 %v230_v31  ;;  %1179 = vmatpush3.msra.mxu0 %v1006_v30  ;;  %v235_v37 = vld [vmem:[#allocation2 + $0x21] sm:$0xff]  ;;  %v244_v40 = vld [vmem:[#allocation2 + $0x91] sm:$0xff] }
  0x24   : > { %1129 = vmatprep.mubr.msk.f32.mxu1 %vm150_vm0, %v242_v32  ;;  %1141 = vmatpush3.msra.mxu1 %v230_v31  ;;  %v236_v42 = vld [vmem:[#allocation2 + $0x31] sm:$0xff]  ;;  %v245_v43 = vld [vmem:[#allocation2 + $0x99] sm:$0xff]  ;;  %v209_v58 = vld [vmem:[#allocation2 + $0x8] sm:$0xff] }
  0x25   : > { %1180 = vmatprep.subr.mxu0 %v1005_v33  ;;  %1117 = vmatprep.mubr.msk.f32.mxu0 %vm150_vm0, %v234_v34  ;;  %v237_v45 = vld [vmem:[#allocation2 + $0x39] sm:$0xff]  ;;  %v246_v48 = vld [vmem:[#allocation2 + $0xa9] sm:$0xff] }
  0x26   : > { %1130 = vmatmul.mubr.msk.f32.gmra.mxu1 %vm150_vm0, %v243_v35  ;;  %1142 = vmatprep.subr.mxu1 %v229_v36  ;;  %v238_v50 = vld [vmem:[#allocation2 + $0x49] sm:$0xff]  ;;  %v247_v51 = vld [vmem:[#allocation2 + $0xb1] sm:$0xff]  ;;  %v208_v56 = vld [vmem:[#allocation2] sm:$0xff] }
  0x27   : > { %1181 = vmatpush3.msra.mxu0 %v1005_v33  ;;  %1143 = vmatpush3.msra.mxu1 %v229_v36  ;;  %v239_v53 = vld [vmem:[#allocation2 + $0x51] sm:$0xff]  ;;  %v643_v59 = vld [vmem:[#allocation2 + $0x2] sm:$0xff]  ;;  %v645_v62 = vld [vmem:[#allocation2 + $0x1a] sm:$0xff] }
  0x28   : > { %1118 = vmatmul.mubr.msk.f32.gmra.mxu0 %vm150_vm0, %v235_v37  ;;  %1182 = vmatprep.subr.mxu0 %v1004_v38  ;;  %v210_v60 = vld [vmem:[#allocation2 + $0x18] sm:$0xff]  ;;  %v211_v63 = vld [vmem:[#allocation2 + $0x20] sm:$0xff]  ;;  %v212_v0 = vld [vmem:[#allocation2 + $0x30] sm:$0xff] }
  0x29   : > { %1144 = vmatprep.subr.mxu1 %v228_v39  ;;  %1183 = vmatpush3.msra.mxu0 %v1004_v38  ;;  %v646_v1 = vld [vmem:[#allocation2 + $0x22] sm:$0xff]  ;;  %v647_v2 = vld [vmem:[#allocation2 + $0x32] sm:$0xff]  ;;  %v648_v5 = vld [vmem:[#allocation2 + $0x3a] sm:$0xff] }
  0x2a   : > { %1132 = vmatprep.mubr.msk.f32.mxu1 %vm150_vm0, %v244_v40  ;;  %1145 = vmatpush3.msra.mxu1 %v228_v39  ;;  %v213_v3 = vld [vmem:[#allocation2 + $0x38] sm:$0xff]  ;;  %v214_v4 = vld [vmem:[#allocation2 + $0x48] sm:$0xff]  ;;  %v215_v7 = vld [vmem:[#allocation2 + $0x50] sm:$0xff] }
  0x2b   : > { %1184 = vmatprep.subr.mxu0 %v1003_v41  ;;  %1120 = vmatprep.mubr.msk.f32.mxu0 %vm150_vm0, %v236_v42  ;;  %v649_v6 = vld [vmem:[#allocation2 + $0x4a] sm:$0xff]  ;;  %v216_v8 = vld [vmem:[#allocation2 + $0x60] sm:$0xff]  ;;  %v650_v9 = vld [vmem:[#allocation2 + $0x52] sm:$0xff] }
  0x2c   : > { %1133 = vmatmul.mubr.msk.f32.gmra.mxu1 %vm150_vm0, %v245_v43  ;;  %1146 = vmatprep.subr.mxu1 %v227_v44  ;;  %v651_v10 = vld [vmem:[#allocation2 + $0x62] sm:$0xff]  ;;  %v218_v12 = vld [vmem:[#allocation2 + $0x78] sm:$0xff]  ;;  %v652_v13 = vld [vmem:[#allocation2 + $0x6a] sm:$0xff] }
  0x2d   : > { %1185 = vmatpush3.msra.mxu0 %v1003_v41  ;;  %1147 = vmatpush3.msra.mxu1 %v227_v44  ;;  %v217_v11 = vld [vmem:[#allocation2 + $0x68] sm:$0xff]  ;;  %v653_v14 = vld [vmem:[#allocation2 + $0x7a] sm:$0xff]  ;;  %v220_v16 = vld [vmem:[#allocation2 + $0x90] sm:$0xff] }
  0x2e   : > { %1121 = vmatmul.mubr.msk.f32.gmra.mxu0 %vm150_vm0, %v237_v45  ;;  %1186 = vmatprep.subr.mxu0 %v1002_v46  ;;  %v219_v15 = vld [vmem:[#allocation2 + $0x80] sm:$0xff]  ;;  %v655_v18 = vld [vmem:[#allocation2 + $0x92] sm:$0xff]  ;;  %v222_v20 = vld [vmem:[#allocation2 + $0xa8] sm:$0xff] }
  0x2f   : > { %1148 = vmatprep.subr.mxu1 %v226_v47  ;;  %1187 = vmatpush3.msra.mxu0 %v1002_v46  ;;  %v654_v17 = vld [vmem:[#allocation2 + $0x82] sm:$0xff]  ;;  %v221_v19 = vld [vmem:[#allocation2 + $0x98] sm:$0xff]  ;;  %v657_v22 = vld [vmem:[#allocation2 + $0xaa] sm:$0xff] }
  0x30   : > { %1135 = vmatprep.mubr.msk.f32.mxu1 %vm150_vm0, %v246_v48  ;;  %1149 = vmatpush3.msra.mxu1 %v226_v47  ;;  %v656_v21 = vld [vmem:[#allocation2 + $0x9a] sm:$0xff]  ;;  %v223_v23 = vld [vmem:[#allocation2 + $0xb0] sm:$0xff] }
  0x31   : > { %1188 = vmatprep.subr.mxu0 %v1001_v49  ;;  %1123 = vmatprep.mubr.msk.f32.mxu0 %vm150_vm0, %v238_v50  ;;  %v658_v24 = vld [vmem:[#allocation2 + $0xb2] sm:$0xff] }
  0x32   : > { %1136 = vmatmul.mubr.msk.f32.gmra.mxu1 %vm150_vm0, %v247_v51  ;;  %1150 = vmatprep.subr.mxu1 %v225_v52 }
  0x33   : > { %1189 = vmatpush3.msra.mxu0 %v1001_v49  ;;  %1151 = vmatpush3.msra.mxu1 %v225_v52 }
  0x34   : > { %1124 = vmatmul.mubr.msk.f32.gmra.mxu0 %vm150_vm0, %v239_v53  ;;  %1190 = vmatprep.subr.mxu0 %v1000_v54 }
  0x35   : > { %1152 = vmatprep.subr.mxu1 %v224_v55  ;;  %1191 = vmatpush3.msra.mxu0 %v1000_v54 }
  0x36   : > { %1153 = vmatpush3.msra.mxu1 %v224_v55  ;;  %1154 = vmatprep.mubr.msk.f32.mxu1 %vm150_vm0, %v208_v56 }
  0x37   : > { %1192 = vmatprep.subr.mxu0 %v999_v57  ;;  %1155 = vmatmul.mubr.msk.f32.vlgmr.msra.gmra.mxu1 %vm150_vm0, %v209_v58 }
  0x38   : > { %1193 = vmatpush3.msra.mxu0 %v999_v57  ;;  %1194 = vmatprep.mubr.msk.f32.mxu0 %vm150_vm0, %v643_v59 }
  0x39   : > { %1157 = vmatprep.mubr.msk.f32.mxu1 %vm150_vm0, %v210_v60  ;;  %1195 = vmatmul.mubr.msk.f32.vlgmr.msra.gmra.mxu0 %vm150_vm0, %v644_v61 }
  0x3a   : > { %1197 = vmatprep.mubr.msk.f32.mxu0 %vm150_vm0, %v645_v62 }
  0x3b   : > { %1158 = vmatmul.mubr.msk.f32.gmra.mxu1 %vm150_vm0, %v211_v63 }
  0x3c   : > { %1160 = vmatprep.mubr.msk.f32.mxu1 %vm150_vm0, %v212_v0 }
  0x3d   : > { %1198 = vmatmul.mubr.msk.f32.gmra.mxu0 %vm150_vm0, %v646_v1 }
  0x3e   : > { %1200 = vmatprep.mubr.msk.f32.mxu0 %vm150_vm0, %v647_v2 }
  0x3f   : > { %1161 = vmatmul.mubr.msk.f32.gmra.mxu1 %vm150_vm0, %v213_v3 }
  0x40   : > { %1163 = vmatprep.mubr.msk.f32.mxu1 %vm150_vm0, %v214_v4 }
  0x41   : > { %1201 = vmatmul.mubr.msk.f32.gmra.mxu0 %vm150_vm0, %v648_v5 }
  0x42   : > { %1203 = vmatprep.mubr.msk.f32.mxu0 %vm150_vm0, %v649_v6 }
  0x43   : > { %1164 = vmatmul.mubr.msk.f32.gmra.mxu1 %vm150_vm0, %v215_v7 }
  0x44   : > { %1166 = vmatprep.mubr.msk.f32.mxu1 %vm150_vm0, %v216_v8 }
  0x45   : > { %1204 = vmatmul.mubr.msk.f32.gmra.mxu0 %vm150_vm0, %v650_v9 }
  0x46   : > { %1206 = vmatprep.mubr.msk.f32.mxu0 %vm150_vm0, %v651_v10 }
  0x47   : > { %1167 = vmatmul.mubr.msk.f32.gmra.mxu1 %vm150_vm0, %v217_v11 }
  0x48   : > { %1169 = vmatprep.mubr.msk.f32.mxu1 %vm150_vm0, %v218_v12 }
  0x49   : > { %1207 = vmatmul.mubr.msk.f32.gmra.mxu0 %vm150_vm0, %v652_v13 }
  0x4a   : > { %1209 = vmatprep.mubr.msk.f32.mxu0 %vm150_vm0, %v653_v14 }
  0x4b   : > { %1170 = vmatmul.mubr.msk.f32.gmra.mxu1 %vm150_vm0, %v219_v15 }
  0x4c   : > { %1172 = vmatprep.mubr.msk.f32.mxu1 %vm150_vm0, %v220_v16 }
  0x4d   : > { %1210 = vmatmul.mubr.msk.f32.gmra.mxu0 %vm150_vm0, %v654_v17 }
  0x4e   : > { %1212 = vmatprep.mubr.msk.f32.mxu0 %vm150_vm0, %v655_v18 }
  0x4f   : > { %1173 = vmatmul.mubr.msk.f32.gmra.mxu1 %vm150_vm0, %v221_v19 }
  0x50   : > { %1175 = vmatprep.mubr.msk.f32.mxu1 %vm150_vm0, %v222_v20 }
  0x51   : > { %1213 = vmatmul.mubr.msk.f32.gmra.mxu0 %vm150_vm0, %v656_v21 }
  0x52   : > { %1215 = vmatprep.mubr.msk.f32.mxu0 %vm150_vm0, %v657_v22 }
  0x53   : > { %1176 = vmatmul.mubr.msk.f32.gmra.mxu1 %vm150_vm0, %v223_v23 }
  0x55   : > { %1216 = vmatmul.mubr.msk.f32.gmra.mxu0 %vm150_vm0, %v658_v24 }
  0xe1   : > { %v1128_v25 = vpop.f32.mrf.mxu1 }
  0xe2   : > { %v1116_v26 = vpop.f32.mrf.mxu0 }
  0xe3   : > { %v1456_v27 = vpop.f32.mrf.mxu1 }
  0xe4   : > { %v371_v28 = vpop.f32.mrf.mxu0 }
  0xe6   : > { %v1458_v29 = vpop.f32.mrf.mxu1 }
  0xe8   : > { %v1119_v30 = vpop.f32.mrf.mxu0  ;;  %v1460_v31 = vpop.f32.mrf.mxu1 }
  0xea   : > { %v381_v32 = vpop.f32.mrf.mxu0 }
  0xec   : > { %v1462_v33 = vpop.f32.mrf.mxu1 }
  0xee   : > { %v1122_v34 = vpop.f32.mrf.mxu0  ;;  %v1466_v35 = vpop.f32.mrf.mxu1 }
  0xf0   : > { %v391_v36 = vpop.f32.mrf.mxu0 }
  0xf2   : > { %v1468_v37 = vpop.f32.mrf.mxu1 }
  0xf4   : > { %v1125_v38 = vpop.f32.mrf.mxu0  ;;  %v1470_v39 = vpop.f32.mrf.mxu1 }
  0xf6   : > { %v401_v40 = vpop.f32.mrf.mxu0 }
  0xf7   : > { %v1156_v41 = vpop.f32.mrf.mxu1 }
  0xf8   : > { %v570_v42 = vadd.f32 %v1156_v41, %v1116_v26 }
  0xf9   : > { %v1196_v43 = vpop.f32.mrf.mxu0  ;;  %v564_v44 = vpop.f32.mrf.mxu1 }
  0xfa   : > { %v862_v45 = vadd.f32 %v1196_v43, %v570_v42  ;;  %v565_v46 = vadd.f32 %v564_v44, %v371_v28 }
  0xfb   : > { %v782_v47 = vpop.f32.mrf.mxu0  ;;  %v1159_v48 = vpop.f32.mrf.mxu1 }
  0xfc   : > { %878 = vst [vmem:[%s1475_s16 + $0x8] sm:$0xff] %v862_v45  ;;  %v861_v49 = vadd.f32 %v782_v47, %v565_v46  ;;  %v580_v50 = vadd.f32 %v1159_v48, %v1119_v30 }
  0xfd   : > { %v1199_v51 = vpop.f32.mrf.mxu0  ;;  %v574_v52 = vpop.f32.mrf.mxu1 }
  0xfe   : > { %877 = vst [vmem:[%s1475_s16] sm:$0xff] %v861_v49  ;;  %v864_v53 = vadd.f32 %v1199_v51, %v580_v50  ;;  %v575_v54 = vadd.f32 %v574_v52, %v381_v32 }
  0xff   : > { %v792_v55 = vpop.f32.mrf.mxu0  ;;  %v1162_v56 = vpop.f32.mrf.mxu1 }
 0x100   : > { %880 = vst [vmem:[%s1475_s16 + $0x18] sm:$0xff] %v864_v53  ;;  %v863_v57 = vadd.f32 %v792_v55, %v575_v54  ;;  %v590_v58 = vadd.f32 %v1162_v56, %v1122_v34 }
 0x101   : > { %v1202_v59 = vpop.f32.mrf.mxu0  ;;  %v584_v60 = vpop.f32.mrf.mxu1 }
 0x102   : > { %879 = vst [vmem:[%s1475_s16 + $0x10] sm:$0xff] %v863_v57  ;;  %v866_v61 = vadd.f32 %v1202_v59, %v590_v58  ;;  %v585_v62 = vadd.f32 %v584_v60, %v391_v36 }
 0x103   : > { %v802_v63 = vpop.f32.mrf.mxu0  ;;  %v1165_v0 = vpop.f32.mrf.mxu1 }
 0x104   : > { %882 = vst [vmem:[%s1475_s16 + $0x28] sm:$0xff] %v866_v61  ;;  %v865_v1 = vadd.f32 %v802_v63, %v585_v62  ;;  %v600_v2 = vadd.f32 %v1165_v0, %v1125_v38 }
 0x105   : > { %v1205_v3 = vpop.f32.mrf.mxu0  ;;  %v594_v4 = vpop.f32.mrf.mxu1 }
 0x106   : > { %881 = vst [vmem:[%s1475_s16 + $0x20] sm:$0xff] %v865_v1  ;;  %v868_v5 = vadd.f32 %v1205_v3, %v600_v2  ;;  %v595_v6 = vadd.f32 %v594_v4, %v401_v40 }
 0x107   : > { %v812_v7 = vpop.f32.mrf.mxu0  ;;  %v1168_v8 = vpop.f32.mrf.mxu1 }
 0x108   : > { %884 = vst [vmem:[%s1475_s16 + $0x38] sm:$0xff] %v868_v5  ;;  %v867_v9 = vadd.f32 %v812_v7, %v595_v6  ;;  %v610_v10 = vadd.f32 %v1168_v8, %v1128_v25 }
 0x109   : > { %v1208_v11 = vpop.f32.mrf.mxu0  ;;  %v604_v12 = vpop.f32.mrf.mxu1 }
 0x10a   : > { %883 = vst [vmem:[%s1475_s16 + $0x30] sm:$0xff] %v867_v9  ;;  %v870_v13 = vadd.f32 %v1208_v11, %v610_v10  ;;  %v605_v14 = vadd.f32 %v604_v12, %v1456_v27 }
 0x10b   : > { %v822_v15 = vpop.f32.mrf.mxu0  ;;  %v1171_v16 = vpop.f32.mrf.mxu1 }
 0x10c   : > { %886 = vst [vmem:[%s1475_s16 + $0x48] sm:$0xff] %v870_v13  ;;  %v869_v17 = vadd.f32 %v822_v15, %v605_v14  ;;  %v620_v18 = vadd.f32 %v1171_v16, %v1458_v29 }
 0x10d   : > { %v1211_v19 = vpop.f32.mrf.mxu0  ;;  %v614_v20 = vpop.f32.mrf.mxu1 }
 0x10e   : > { %885 = vst [vmem:[%s1475_s16 + $0x40] sm:$0xff] %v869_v17  ;;  %v872_v21 = vadd.f32 %v1211_v19, %v620_v18  ;;  %v615_v22 = vadd.f32 %v614_v20, %v1460_v31 }
 0x10f   : > { %v832_v23 = vpop.f32.mrf.mxu0  ;;  %v1174_v24 = vpop.f32.mrf.mxu1 }
 0x110   : > { %888 = vst [vmem:[%s1475_s16 + $0x58] sm:$0xff] %v872_v21  ;;  %v871_v25 = vadd.f32 %v832_v23, %v615_v22  ;;  %v630_v26 = vadd.f32 %v1174_v24, %v1462_v33 }
 0x111   : > { %v1214_v27 = vpop.f32.mrf.mxu0  ;;  %v624_v28 = vpop.f32.mrf.mxu1 }
 0x112   : > { %887 = vst [vmem:[%s1475_s16 + $0x50] sm:$0xff] %v871_v25  ;;  %v874_v29 = vadd.f32 %v1214_v27, %v630_v26  ;;  %v625_v30 = vadd.f32 %v624_v28, %v1466_v35 }
 0x113   : > { %v842_v32 = vpop.f32.mrf.mxu0  ;;  %v1177_v34 = vpop.f32.mrf.mxu1 }
 0x114   : > { %890 = vst [vmem:[%s1475_s16 + $0x68] sm:$0xff] %v874_v29  ;;  %v873_v36 = vadd.f32 %v842_v32, %v625_v30  ;;  %v640_v31 = vadd.f32 %v1177_v34, %v1468_v37 }
 0x115   : > { %v1217_v38 = vpop.f32.mrf.mxu0  ;;  %v634_v40 = vpop.f32.mrf.mxu1 }
 0x116   : > { %889 = vst [vmem:[%s1475_s16 + $0x60] sm:$0xff] %v873_v36  ;;  %v876_v41 = vadd.f32 %v1217_v38, %v640_v31  ;;  %v635_v33 = vadd.f32 %v634_v40, %v1470_v39 }
 0x117   : > { %v852_v42 = vpop.f32.mrf.mxu0 }
 0x118   : > { %892 = vst [vmem:[%s1475_s16 + $0x78] sm:$0xff] %v876_v41  ;;  %v875_v43 = vadd.f32 %v852_v42, %v635_v33 }
 0x11a   : > { %891 = vst [vmem:[%s1475_s16 + $0x70] sm:$0xff] %v875_v43 }
 0x11b PF: > { %s12_s9 = sadd.s32 1, %s1249_s9  }
 0x11c   : > { %p9_p5 = scmp.ge.s32.totalorder %s12_s9, 4  }
 0x11e   :  { %11 = sbr.rel (!%p9_p5) target bundleno = 1 (0x1), region = 60 }

</bundles_post_ra>
